<compile_context>
chip_gen: v6e
topology: v6e:2x2x1
jax: 0.10.0
libtpu: 0.0.40
codegen_flags: <defaults>
</compile_context>

<pallas_src>
import functools

import jax
import jax.numpy as jnp
from jax import lax
from jax.experimental import pallas as pl
from jax.experimental.pallas import tpu as pltpu


def _round_up(a: int, b: int) -> int:
    return (a + b - 1) // b * b


def _moe_gate_kernel(x_ref, w_ref, idx_ref, wt_ref, *,
                     top_k: int, norm_topk_prob: bool, num_experts: int):
    bt = x_ref.shape[0]

    # fp32 cast of the narrow input happens per tile inside the kernel: matches
    # torch's fp32 F.linear without an fp32 copy of x ever touching HBM.
    x = x_ref[...].astype(jnp.float32)                    # (bT, dim)

    # logits = x @ W^T.  W was pre-transposed to (dim, E) once in the wrapper,
    # so this is a plain [M,K]x[K,N] MXU matmul on lane-major operands.
    logits = jnp.dot(x, w_ref[...],
                     preferred_element_type=jnp.float32)  # (bT, E)

    # Row max (== top-1 logit): reused for the first top-k round and for the
    # numerically stable exp below.
    m = jnp.max(logits, axis=-1, keepdims=True)

    renorm = bool(top_k > 1 and norm_topk_prob)

    # Iterative top-k directly on the raw logits.  Softmax is strictly monotone
    # per row, so indices and tie resolution are identical to topk(softmax(.)),
    # and the full (bT, E) softmax never has to be materialized.
    # NOTE: NaN logits would select the out-of-range sentinel index (clean
    # inputs never hit this; matches the previous behavior).
    lane_iota = lax.broadcasted_iota(jnp.int32, logits.shape, 1)   # (bT, E)
    col_iota = lax.broadcasted_iota(jnp.int32, (bt, top_k), 1)     # (bT, k)
    topk_l = jnp.zeros((bt, top_k), jnp.float32)
    topk_i = jnp.zeros((bt, top_k), jnp.int32)
    s = logits
    for j in range(top_k):
        v = m if j == 0 else jnp.max(s, axis=-1, keepdims=True)    # (bT, 1)
        # Lowest index among ties -> matches torch.topk / lax.top_k.
        i = jnp.min(jnp.where(s == v, lane_iota, num_experts),
                    axis=-1, keepdims=True).astype(jnp.int32)      # (bT, 1)
        topk_l = jnp.where(col_iota == j, v, topk_l)
        topk_i = jnp.where(col_iota == j, i, topk_i)
        if j + 1 < top_k:                     # skip the dead final-round knockout
            s = jnp.where(lane_iota == i, -jnp.inf, s)

    e_top = jnp.exp(topk_l - m)                                    # (bT, k)
    if renorm:
        # The softmax denominator cancels under top-k renormalization, so only
        # the k selected logits are exponentiated; no full-row exp/sum/divide.
        wt = e_top / (jnp.sum(e_top, axis=-1, keepdims=True) + 1e-20)
    else:
        # True softmax values needed: full-row denominator, but only the k
        # selected entries are divided (never a full (bT, E) scores tensor).
        denom = jnp.sum(jnp.exp(logits - m), axis=-1, keepdims=True)
        wt = e_top / denom

    idx_ref[...] = topk_i
    wt_ref[...] = wt


def moe_gate(hidden_states: jax.Array, weight: jax.Array, *,
             top_k: int, norm_topk_prob: bool, block_t: int | None = None):
    """Pallas MoE gate.

    hidden_states: [bsz, seq, dim] (bf16/f32; other float dtypes cast to bf16)
    weight:        [num_routed_experts, dim]
    returns (topk_idx [bsz*seq, top_k] int32, topk_weight [bsz*seq, top_k] f32)
    """
    bsz, seq, h = hidden_states.shape
    num_experts, hw = weight.shape
    assert hw == h
    T = bsz * seq

    # x stays in its narrow native dtype in HBM (the dominant read stream).
    x = hidden_states.reshape(T, h)
    if x.dtype not in (jnp.float32, jnp.bfloat16):
        x = x.astype(jnp.bfloat16)
    # One-time XLA transpose of the small gate weight -> (dim, E) so the kernel
    # does a plain [M,K]x[K,N] matmul against the resident weight block.
    w_t = weight.astype(jnp.float32).T

    # ---- chip-aware tile size and VMEM budget -----------------------------
    try:
        vmem_cap = int(pltpu.get_tpu_info().vmem_capacity_bytes)
    except Exception:                       # conservative (v7x-sized) fallback
        vmem_cap = 64 * 1024 * 1024
    budget = min(int(vmem_cap * 0.7), 96 * 1024 * 1024)

    def est_bytes(bt):
        return (2 * bt * h * x.dtype.itemsize          # double-buffered x tiles
                + bt * h * 4                           # in-kernel fp32 cast of x
                + 2 * num_experts * h * 4              # resident fp32 weight
                + 5 * bt * max(num_experts, 128) * 4   # logits/exp/iota/knockout temps
                + 8 * bt * 128 * 4)                    # (bT,k) accum + output tiles (lane-padded)

    if block_t is None:
        # 128 MiB-VMEM chips (v5e/v6e): 1024-row tiles (~85%+ of HBM roofline);
        # v7x (64 MiB VMEM, 2 TCs): cap at 512 and let the grid split instead.
        block_t = 1024 if vmem_cap >= 100 * 1024 * 1024 else 512
        while block_t > 128 and est_bytes(block_t) > budget:
            block_t //= 2
        if T <= block_t:
            # Keep >=2 grid steps when there is enough work so the "parallel"
            # token axis can split across v7x's two TensorCores.
            block_t = _round_up(pl.cdiv(T, 2), 8) if T >= 512 else T
    else:
        block_t = min(int(block_t), T)
        if block_t < T:
            block_t = _round_up(max(block_t, 8), 8)
            if block_t >= T:
                block_t = T
        block_t = max(block_t, 1)

    # No wrapper-side padding: cdiv grid, Pallas masks the boundary block.
    grid = (pl.cdiv(T, block_t),)

    vmem_limit = int(min(max(est_bytes(block_t) + (8 << 20), 32 * 1024 * 1024),
                         budget))

    kernel = functools.partial(
        _moe_gate_kernel,
        top_k=top_k,
        norm_topk_prob=norm_topk_prob,
        num_experts=num_experts,
    )

    topk_idx, topk_weight = pl.pallas_call(
        kernel,
        out_shape=(
            jax.ShapeDtypeStruct((T, top_k), jnp.int32),
            jax.ShapeDtypeStruct((T, top_k), jnp.float32),
        ),
        grid_spec=pltpu.PrefetchScalarGridSpec(
            num_scalar_prefetch=0,
            grid=grid,
            in_specs=[
                # Token tile.  If profiling shows exposed DMA waits at step
                # boundaries, add pipeline_mode=pl.Buffered(3) here (budgeted).
                pl.BlockSpec((block_t, h), lambda i: (i, 0)),
                # Full (dim, E) gate weight, resident across all grid steps.
                pl.BlockSpec((h, num_experts), lambda i: (0, 0)),
            ],
            out_specs=[
                pl.BlockSpec((block_t, top_k), lambda i: (i, 0)),
                pl.BlockSpec((block_t, top_k), lambda i: (i, 0)),
            ],
        ),
        compiler_params=pltpu.CompilerParams(
            dimension_semantics=("parallel",),
            vmem_limit_bytes=vmem_limit),
    )(x, w_t)

    return topk_idx, topk_weight


def _reference(hidden_states, weight, top_k, norm_topk_prob):
    """Pure-JAX reference mirroring the PyTorch forward."""
    bsz, seq, h = hidden_states.shape
    x = hidden_states.reshape(-1, h).astype(jnp.float32)
    logits = x @ weight.astype(jnp.float32).T
    scores = jax.nn.softmax(logits, axis=-1)
    vals, idxs = lax.top_k(scores, top_k)  # descending, lowest-index ties
    if top_k > 1 and norm_topk_prob:
        vals = vals / (jnp.sum(vals, axis=-1, keepdims=True) + 1e-20)
    return idxs.astype(jnp.int32), vals


if __name__ == "__main__":
    # Small MoEGate config
    num_routed_experts = 16
    num_experts_per_tok = 4
    dim = 32

    key = jax.random.PRNGKey(0)
    k_x1, k_x2, k_w = jax.random.split(key, 3)
    # nn.Parameter(torch.empty(E, dim)) is uninitialized; init deterministically.
    gate_weight = (jax.random.normal(k_w, (num_routed_experts, dim),
                                     dtype=jnp.float32) * 0.02)

    # Case 1: bsz=2, seq=8 -> T=16, single grid step, renormalization on
    # (softmax-free renorm path).
    hs1 = jax.random.normal(k_x1, (2, 8, dim), dtype=jnp.bfloat16)
    idx1, w1 = moe_gate(hs1, gate_weight,
                        top_k=num_experts_per_tok, norm_topk_prob=True)
    jax.block_until_ready((idx1, w1))
    ref_i1, ref_w1 = _reference(hs1, gate_weight, num_experts_per_tok, True)
    assert idx1.shape == (16, num_experts_per_tok)
    assert w1.shape == (16, num_experts_per_tok)
    assert jnp.array_equal(idx1, ref_i1), "case1: top-k indices mismatch"
    assert jnp.allclose(w1, ref_w1, atol=1e-5, rtol=1e-5), "case1: weights mismatch"

    # Case 2: bsz=2, seq=24 -> T=48 with block_t=32: exercises the no-pad
    # cdiv grid with a masked partial boundary block, renormalization off
    # (true-softmax-denominator path).
    hs2 = jax.random.normal(k_x2, (2, 24, dim), dtype=jnp.bfloat16)
    idx2, w2 = moe_gate(hs2, gate_weight,
                        top_k=num_experts_per_tok, norm_topk_prob=False,
                        block_t=32)
    jax.block_until_ready((idx2, w2))
    ref_i2, ref_w2 = _reference(hs2, gate_weight, num_experts_per_tok, False)
    assert idx2.shape == (48, num_experts_per_tok)
    assert jnp.array_equal(idx2, ref_i2), "case2: top-k indices mismatch"
    assert jnp.allclose(w2, ref_w2, atol=1e-5, rtol=1e-5), "case2: weights mismatch"

    print("KERNEL_OK")
</pallas_src>

<mosaic_0001>
module attributes {stable_mosaic.version = 11 : i64} {
  func.func @_moe_gate_kernel(%arg0: i32, %arg1: memref<16x32xbf16, #tpu.memory_space<vmem>>, %arg2: memref<32x16xf32, #tpu.memory_space<vmem>>, %arg3: memref<16x4xi32, #tpu.memory_space<vmem>>, %arg4: memref<16x4xf32, #tpu.memory_space<vmem>>) attributes {dimension_semantics = [#tpu.dimension_semantics<parallel>], iteration_bounds = array<i64: 1>, scalar_prefetch = 0 : i64, scratch_operands = 0 : i64, tpu.core_type = #tpu.core_type<tc>, window_params = [{transform_indices = @transform_0, window_bounds = array<i64: 16, 32>}, {pipeline_mode = #tpu.pipeline_mode<synchronous>, transform_indices = @transform_1, window_bounds = array<i64: 32, 16>}, {transform_indices = @transform_2, window_bounds = array<i64: 16, 4>}, {transform_indices = @transform_3, window_bounds = array<i64: 16, 4>}]} {
    %c0 = arith.constant 0 : index
    %c0_0 = arith.constant 0 : index
    %0 = vector.load %arg1[%c0, %c0_0] : memref<16x32xbf16, #tpu.memory_space<vmem>>, vector<16x32xbf16>
    %1 = arith.extf %0 : vector<16x32xbf16> to vector<16x32xf32>
    %c0_1 = arith.constant 0 : index
    %c0_2 = arith.constant 0 : index
    %2 = vector.load %arg2[%c0_1, %c0_2] : memref<32x16xf32, #tpu.memory_space<vmem>>, vector<32x16xf32>
    %cst = arith.constant dense<0.000000e+00> : vector<16x16xf32>
    %3 = tpu.matmul %1, %2, %cst {dimension_numbers = #tpu.dot_dimension_numbers<[1], [0], [0], [1], [0, 0, 1, 1], [], []>} : vector<16x32xf32>, vector<32x16xf32>, vector<16x16xf32> -> vector<16x16xf32>
    %cst_3 = arith.constant dense<0xFF800000> : vector<16xf32>
    %4 = vector.multi_reduction <maximumf>, %3, %cst_3 [1] : vector<16x16xf32> to vector<16xf32>
    %5 = vector.shape_cast %4 : vector<16xf32> to vector<16x1xf32>
    %6 = tpu.iota {dimensions = array<i32: 1>} : vector<16x16xi32>
    %7 = tpu.iota {dimensions = array<i32: 1>} : vector<16x4xi32>
    %cst_4 = arith.constant 0.000000e+00 : f32
    %8 = vector.broadcast %cst_4 : f32 to vector<16x4xf32>
    %c0_i32 = arith.constant 0 : i32
    %9 = vector.broadcast %c0_i32 : i32 to vector<16x4xi32>
    %10 = vector.broadcast %5 : vector<16x1xf32> to vector<16x16xf32>
    %11 = arith.cmpf oeq, %3, %10 : vector<16x16xf32>
    %c16_i32 = arith.constant 16 : i32
    %12 = vector.broadcast %c16_i32 : i32 to vector<16x16xi32>
    %13 = arith.select %11, %6, %12 : vector<16x16xi1>, vector<16x16xi32>
    %cst_5 = arith.constant dense<2147483647> : vector<16xi32>
    %14 = vector.multi_reduction <minsi>, %13, %cst_5 [1] : vector<16x16xi32> to vector<16xi32>
    %15 = vector.shape_cast %14 : vector<16xi32> to vector<16x1xi32>
    %c0_i32_6 = arith.constant 0 : i32
    %16 = vector.broadcast %c0_i32_6 : i32 to vector<16x4xi32>
    %17 = arith.cmpi eq, %7, %16 : vector<16x4xi32>
    %18 = vector.shape_cast %5 : vector<16x1xf32> to vector<16x1xf32>
    %19 = vector.broadcast %18 : vector<16x1xf32> to vector<16x4xf32>
    %20 = arith.select %17, %19, %8 : vector<16x4xi1>, vector<16x4xf32>
    %c0_i32_7 = arith.constant 0 : i32
    %21 = vector.broadcast %c0_i32_7 : i32 to vector<16x4xi32>
    %22 = arith.cmpi eq, %7, %21 : vector<16x4xi32>
    %23 = vector.shape_cast %15 : vector<16x1xi32> to vector<16x1xi32>
    %24 = vector.broadcast %23 : vector<16x1xi32> to vector<16x4xi32>
    %25 = arith.select %22, %24, %9 : vector<16x4xi1>, vector<16x4xi32>
    %26 = vector.broadcast %15 : vector<16x1xi32> to vector<16x16xi32>
    %27 = arith.cmpi eq, %6, %26 : vector<16x16xi32>
    %cst_8 = arith.constant 0xFF800000 : f32
    %28 = vector.broadcast %cst_8 : f32 to vector<16x16xf32>
    %29 = arith.select %27, %28, %3 : vector<16x16xi1>, vector<16x16xf32>
    %cst_9 = arith.constant dense<0xFF800000> : vector<16xf32>
    %30 = vector.multi_reduction <maximumf>, %29, %cst_9 [1] : vector<16x16xf32> to vector<16xf32>
    %31 = vector.shape_cast %30 : vector<16xf32> to vector<16x1xf32>
    %32 = vector.broadcast %31 : vector<16x1xf32> to vector<16x16xf32>
    %33 = arith.cmpf oeq, %29, %32 : vector<16x16xf32>
    %c16_i32_10 = arith.constant 16 : i32
    %34 = vector.broadcast %c16_i32_10 : i32 to vector<16x16xi32>
    %35 = arith.select %33, %6, %34 : vector<16x16xi1>, vector<16x16xi32>
    %cst_11 = arith.constant dense<2147483647> : vector<16xi32>
    %36 = vector.multi_reduction <minsi>, %35, %cst_11 [1] : vector<16x16xi32> to vector<16xi32>
    %37 = vector.shape_cast %36 : vector<16xi32> to vector<16x1xi32>
    %c1_i32 = arith.constant 1 : i32
    %38 = vector.broadcast %c1_i32 : i32 to vector<16x4xi32>
    %39 = arith.cmpi eq, %7, %38 : vector<16x4xi32>
    %40 = vector.shape_cast %31 : vector<16x1xf32> to vector<16x1xf32>
    %41 = vector.broadcast %40 : vector<16x1xf32> to vector<16x4xf32>
    %42 = arith.select %39, %41, %20 : vector<16x4xi1>, vector<16x4xf32>
    %c1_i32_12 = arith.constant 1 : i32
    %43 = vector.broadcast %c1_i32_12 : i32 to vector<16x4xi32>
    %44 = arith.cmpi eq, %7, %43 : vector<16x4xi32>
    %45 = vector.shape_cast %37 : vector<16x1xi32> to vector<16x1xi32>
    %46 = vector.broadcast %45 : vector<16x1xi32> to vector<16x4xi32>
    %47 = arith.select %44, %46, %25 : vector<16x4xi1>, vector<16x4xi32>
    %48 = vector.broadcast %37 : vector<16x1xi32> to vector<16x16xi32>
    %49 = arith.cmpi eq, %6, %48 : vector<16x16xi32>
    %cst_13 = arith.constant 0xFF800000 : f32
    %50 = vector.broadcast %cst_13 : f32 to vector<16x16xf32>
    %51 = arith.select %49, %50, %29 : vector<16x16xi1>, vector<16x16xf32>
    %cst_14 = arith.constant dense<0xFF800000> : vector<16xf32>
    %52 = vector.multi_reduction <maximumf>, %51, %cst_14 [1] : vector<16x16xf32> to vector<16xf32>
    %53 = vector.shape_cast %52 : vector<16xf32> to vector<16x1xf32>
    %54 = vector.broadcast %53 : vector<16x1xf32> to vector<16x16xf32>
    %55 = arith.cmpf oeq, %51, %54 : vector<16x16xf32>
    %c16_i32_15 = arith.constant 16 : i32
    %56 = vector.broadcast %c16_i32_15 : i32 to vector<16x16xi32>
    %57 = arith.select %55, %6, %56 : vector<16x16xi1>, vector<16x16xi32>
    %cst_16 = arith.constant dense<2147483647> : vector<16xi32>
    %58 = vector.multi_reduction <minsi>, %57, %cst_16 [1] : vector<16x16xi32> to vector<16xi32>
    %59 = vector.shape_cast %58 : vector<16xi32> to vector<16x1xi32>
    %c2_i32 = arith.constant 2 : i32
    %60 = vector.broadcast %c2_i32 : i32 to vector<16x4xi32>
    %61 = arith.cmpi eq, %7, %60 : vector<16x4xi32>
    %62 = vector.shape_cast %53 : vector<16x1xf32> to vector<16x1xf32>
    %63 = vector.broadcast %62 : vector<16x1xf32> to vector<16x4xf32>
    %64 = arith.select %61, %63, %42 : vector<16x4xi1>, vector<16x4xf32>
    %c2_i32_17 = arith.constant 2 : i32
    %65 = vector.broadcast %c2_i32_17 : i32 to vector<16x4xi32>
    %66 = arith.cmpi eq, %7, %65 : vector<16x4xi32>
    %67 = vector.shape_cast %59 : vector<16x1xi32> to vector<16x1xi32>
    %68 = vector.broadcast %67 : vector<16x1xi32> to vector<16x4xi32>
    %69 = arith.select %66, %68, %47 : vector<16x4xi1>, vector<16x4xi32>
    %70 = vector.broadcast %59 : vector<16x1xi32> to vector<16x16xi32>
    %71 = arith.cmpi eq, %6, %70 : vector<16x16xi32>
    %cst_18 = arith.constant 0xFF800000 : f32
    %72 = vector.broadcast %cst_18 : f32 to vector<16x16xf32>
    %73 = arith.select %71, %72, %51 : vector<16x16xi1>, vector<16x16xf32>
    %cst_19 = arith.constant dense<0xFF800000> : vector<16xf32>
    %74 = vector.multi_reduction <maximumf>, %73, %cst_19 [1] : vector<16x16xf32> to vector<16xf32>
    %75 = vector.shape_cast %74 : vector<16xf32> to vector<16x1xf32>
    %76 = vector.broadcast %75 : vector<16x1xf32> to vector<16x16xf32>
    %77 = arith.cmpf oeq, %73, %76 : vector<16x16xf32>
    %c16_i32_20 = arith.constant 16 : i32
    %78 = vector.broadcast %c16_i32_20 : i32 to vector<16x16xi32>
    %79 = arith.select %77, %6, %78 : vector<16x16xi1>, vector<16x16xi32>
    %cst_21 = arith.constant dense<2147483647> : vector<16xi32>
    %80 = vector.multi_reduction <minsi>, %79, %cst_21 [1] : vector<16x16xi32> to vector<16xi32>
    %81 = vector.shape_cast %80 : vector<16xi32> to vector<16x1xi32>
    %c3_i32 = arith.constant 3 : i32
    %82 = vector.broadcast %c3_i32 : i32 to vector<16x4xi32>
    %83 = arith.cmpi eq, %7, %82 : vector<16x4xi32>
    %84 = vector.shape_cast %75 : vector<16x1xf32> to vector<16x1xf32>
    %85 = vector.broadcast %84 : vector<16x1xf32> to vector<16x4xf32>
    %86 = arith.select %83, %85, %64 : vector<16x4xi1>, vector<16x4xf32>
    %c3_i32_22 = arith.constant 3 : i32
    %87 = vector.broadcast %c3_i32_22 : i32 to vector<16x4xi32>
    %88 = arith.cmpi eq, %7, %87 : vector<16x4xi32>
    %89 = vector.shape_cast %81 : vector<16x1xi32> to vector<16x1xi32>
    %90 = vector.broadcast %89 : vector<16x1xi32> to vector<16x4xi32>
    %91 = arith.select %88, %90, %69 : vector<16x4xi1>, vector<16x4xi32>
    %92 = vector.broadcast %5 : vector<16x1xf32> to vector<16x4xf32>
    %93 = arith.subf %86, %92 : vector<16x4xf32>
    %94 = math.exp %93 : vector<16x4xf32>
    %cst_23 = arith.constant dense<0.000000e+00> : vector<16xf32>
    %95 = vector.multi_reduction <add>, %94, %cst_23 [1] : vector<16x4xf32> to vector<16xf32>
    %96 = vector.shape_cast %95 : vector<16xf32> to vector<16x1xf32>
    %cst_24 = arith.constant 9.99999968E-21 : f32
    %97 = vector.broadcast %cst_24 : f32 to vector<16x1xf32>
    %98 = arith.addf %96, %97 : vector<16x1xf32>
    %99 = vector.broadcast %98 : vector<16x1xf32> to vector<16x4xf32>
    %100 = arith.divf %94, %99 : vector<16x4xf32>
    %c0_25 = arith.constant 0 : index
    %c0_26 = arith.constant 0 : index
    %101 = vector.load %arg3[%c0_25, %c0_26] : memref<16x4xi32, #tpu.memory_space<vmem>>, vector<16x4xi32>
    tpu.vector_store %arg3[%c0_25, %c0_26], %91 {strides = array<i32>} : memref<16x4xi32, #tpu.memory_space<vmem>>, vector<16x4xi32>,
    %c0_27 = arith.constant 0 : index
    %c0_28 = arith.constant 0 : index
    %102 = vector.load %arg4[%c0_27, %c0_28] : memref<16x4xf32, #tpu.memory_space<vmem>>, vector<16x4xf32>
    tpu.vector_store %arg4[%c0_27, %c0_28], %100 {strides = array<i32>} : memref<16x4xf32, #tpu.memory_space<vmem>>, vector<16x4xf32>,
    return
  }
  func.func @transform_0(%arg0: i32) -> (i32, i32) {
    %c0_i32 = arith.constant 0 : i32
    %c0_i32_0 = arith.constant 0 : i32
    return %arg0, %c0_i32 : i32, i32
  }
  func.func @transform_1(%arg0: i32) -> (i32, i32) {
    %c0_i32 = arith.constant 0 : i32
    %c0_i32_0 = arith.constant 0 : i32
    %c0_i32_1 = arith.constant 0 : i32
    return %c0_i32, %c0_i32_0 : i32, i32
  }
  func.func @transform_2(%arg0: i32) -> (i32, i32) {
    %c0_i32 = arith.constant 0 : i32
    %c0_i32_0 = arith.constant 0 : i32
    return %arg0, %c0_i32 : i32, i32
  }
  func.func @transform_3(%arg0: i32) -> (i32, i32) {
    %c0_i32 = arith.constant 0 : i32
    %c0_i32_0 = arith.constant 0 : i32
    return %arg0, %c0_i32 : i32, i32
  }
}

</mosaic_0001>

<bundles_post_ra>
// kernel: tpu_custom_call.1
= control target key start
LH: loop header
LB: loop body
LE: loop exit
PB: predicated region body
PF: predicated region fallthrough
CT: control target
= control target key end

     0   :  { %vm21_vm0 = vcmask 261120   ;;  %vm103_vm1 = vcmask 130048   ;;  %v110_v11 = vlaneseq  ;;  %s505_s1 = inlined_call_operand.vmem [shape: f32[32,16], index: 1, kind: input, shape index: {}]   ;;  %s506_s0 = inlined_call_operand.vmem [shape: bf16[16,32], index: 0, kind: input, shape index: {}]   ;;  %s507_s3 = inlined_call_operand.vmem [shape: f32[16,4], index: 3, kind: output, shape index: {1}]   ;;  %s508_s2 = inlined_call_operand.vmem [shape: s32[16,4], index: 2, kind: output, shape index: {0}]  }
   0x1   :  { %v20_v0 = vld [vmem:[%s505_s1 + $0x18] sm:$0xff]  ;;  %v19_v1 = vld [vmem:[%s505_s1 + $0x10] sm:$0xff]  ;;  %v332_v2 = vld [vmem:[%s506_s0] sm:$0xff]  }
   0x2   :  { %341 = vmatprep.subr.mxu0 %v20_v0  ;;  %v18_v3 = vld [vmem:[%s505_s1 + $0x8] sm:$0xff]  ;;  %v333_v4 = vunpack.c.l.bf16 %v332_v2  ;;  %v17_v5 = vld [vmem:[%s505_s1] sm:$0xff]  ;;  %v334_v6 = vunpack.c.h.bf16 %v332_v2  ;;  %v397_v12 = vand.u32 127, %v110_v11 }
   0x3   :  { %342 = vmatpush3.msra.mxu0 %v20_v0 }
   0x4   :  { %343 = vmatprep.subr.mxu0 %v19_v1  ;;  %349 = vmatprep.mubr.msk.f32.mxu0 %vm21_vm0, %v333_v4  ;;  %vm146_vm12 = vcmp.eq.s32.totalorder %v397_v12, 0  ;;  %vm195_vm13 = vcmp.eq.s32.totalorder %v397_v12, 1 }
   0x5   :  { %344 = vmatpush3.msra.mxu0 %v19_v1 }
   0x6   :  { %345 = vmatprep.subr.mxu0 %v18_v3 }
   0x7   :  { %346 = vmatpush3.msra.mxu0 %v18_v3 }
   0x8   :  { %347 = vmatprep.subr.mxu0 %v17_v5 }
   0x9   :  { %348 = vmatpush3.msra.mxu0 %v17_v5 }
   0xa   :  { %350 = vmatmul.mubr.msk.f32.vlgmr.msra.gmra.mxu0 %vm21_vm0, %v334_v6 }
  0xca   :  { %v351_v7 = vpop.f32.mrf.mxu0 }
  0xcb   :  { %v107_v10 = vsel %vm103_vm1, %v351_v7, -inf }
  0xcc   :  { %v94_v8 = vpop.f32.mrf.mxu0 }
  0xcd   :  { %v104_v9 = vsel %vm103_vm1, %v94_v8, -inf }
  0xce   :  { %105 = vmax.xlane.f32.xlu0 %v104_v9 }
  0xd2   :  { %108 = vmax.xlane.f32.xlu0 %v107_v10 }
 0x157   :  { %v399_v13 = vpop.xlane.xlu0 %105 }
 0x158   :  { %vm112_vm2 = vcmp.eq.f32.partialorder %v94_v8, %v399_v13 }
 0x159   :  { %v114_v14 = vsel %vm112_vm2, %v397_v12, 16 }
 0x15a   :  { %v116_v15 = vsel %vm103_vm1, %v114_v14, 2147483647 }
 0x15b   :  { %v404_v16 = vpop.xlane.xlu0 %108  ;;  %v118_v17 = vshra.s32 %v116_v15, 16  ;;  %v117_v23 = vand.u32 65535, %v116_v15 }
 0x15c   :  { %vm113_vm3 = vcmp.eq.f32.partialorder %v351_v7, %v404_v16 }
 0x15d   :  { %v120_v18 = vcvt.s32.f32 %v118_v17  ;;  %v115_v19 = vsel %vm113_vm3, %v397_v12, 16  ;;  %v119_v25 = vcvt.s32.f32 %v117_v23 }
 0x15e   :  { %v131_v20 = vsel %vm103_vm1, %v115_v19, 2147483647 }
 0x15f   :  { %121 = vmin.xlane.f32.xlu1 %v120_v18  ;;  %v133_v21 = vshra.s32 %v131_v20, 16  ;;  %v132_v26 = vand.u32 65535, %v131_v20 }
 0x161   :  { %v135_v22 = vcvt.s32.f32 %v133_v21  ;;  %v134_v29 = vcvt.s32.f32 %v132_v26 }
 0x163   :  { %136 = vmin.xlane.f32.xlu1 %v135_v22 }
 0x1e8   :  { %v122_v24 = vpop.xlane.xlu1 %121 }
 0x1e9   :  { %vm123_vm4 = vcmp.eq.f32.partialorder %v120_v18, %v122_v24  ;;  %v128_v31 = vcvt.f32.s32 %v122_v24 }
 0x1ea   :  { %v124_v27 = vsel %vm123_vm4, %v119_v25, inf }
 0x1eb   :  { %125 = vmin.xlane.f32.xlu0 %v124_v27  ;;  %v129_v33 = vshll.u32 %v128_v31, 16 }
 0x1ec   :  { %v137_v28 = vpop.xlane.xlu1 %136 }
 0x1ed   :  { %vm138_vm5 = vcmp.eq.f32.partialorder %v135_v22, %v137_v28  ;;  %v143_v34 = vcvt.f32.s32 %v137_v28 }
 0x1ee   :  { %v139_v30 = vsel %vm138_vm5, %v134_v29, inf  ;;  %vm244_vm5 = vcmp.eq.s32.totalorder %v397_v12, 2 }
 0x1ef   :  { %140 = vmin.xlane.f32.xlu1 %v139_v30  ;;  %v144_v38 = vshll.u32 %v143_v34, 16 }
 0x274   :  { %v126_v32 = vpop.xlane.xlu0 %125 }
 0x275   :  { %v127_v35 = vcvt.f32.s32 %v126_v32 }
 0x277   :  { %v130_v36 = vadd.s32 %v129_v33, %v127_v35 }
 0x278   :  { %v141_v37 = vpop.xlane.xlu1 %140 }
 0x279   :  { %v142_v39 = vcvt.f32.s32 %v141_v37  ;;  %vm151_vm6 = vcmp.eq.s32.totalorder %v397_v12, %v130_v36  ;;  %v149_v5 = vsel %vm146_vm12, %v130_v36, 0 }
 0x27a   :  { %v153_v40 = vsel %vm151_vm6, -inf, %v94_v8 }
 0x27b   :  { %v145_v41 = vadd.s32 %v144_v38, %v142_v39  ;;  %v155_v42 = vsel %vm103_vm1, %v153_v40, -inf }
 0x27c   :  { %156 = vmax.xlane.f32.xlu0 %v155_v42 }
 0x27d   :  { %vm152_vm7 = vcmp.eq.s32.totalorder %v397_v12, %v145_v41  ;;  %v150_v15 = vsel %vm146_vm12, %v145_v41, 0 }
 0x27e   :  { %v154_v43 = vsel %vm152_vm7, -inf, %v351_v7 }
 0x27f   :  { %v158_v44 = vsel %vm103_vm1, %v154_v43, -inf }
 0x280   :  { %159 = vmax.xlane.f32.xlu1 %v158_v44 }
 0x305   :  { %v413_v45 = vpop.xlane.xlu0 %156 }
 0x306   :  { %vm161_vm8 = vcmp.eq.f32.partialorder %v153_v40, %v413_v45 }
 0x307   :  { %v163_v46 = vsel %vm161_vm8, %v397_v12, 16  ;;  %vm293_vm8 = vcmp.eq.s32.totalorder %v397_v12, 3 }
 0x308   :  { %v165_v47 = vsel %vm103_vm1, %v163_v46, 2147483647 }
 0x309   :  { %v418_v48 = vpop.xlane.xlu1 %159  ;;  %v167_v49 = vshra.s32 %v165_v47, 16  ;;  %v166_v55 = vand.u32 65535, %v165_v47 }
 0x30a   :  { %vm162_vm9 = vcmp.eq.f32.partialorder %v154_v43, %v418_v48 }
 0x30b   :  { %v164_v50 = vsel %vm162_vm9, %v397_v12, 16  ;;  %v169_v51 = vcvt.s32.f32 %v167_v49  ;;  %v168_v57 = vcvt.s32.f32 %v166_v55 }
 0x30c   :  { %v180_v52 = vsel %vm103_vm1, %v164_v50, 2147483647 }
 0x30d   :  { %170 = vmin.xlane.f32.xlu0 %v169_v51  ;;  %v182_v53 = vshra.s32 %v180_v52, 16  ;;  %v181_v58 = vand.u32 65535, %v180_v52 }
 0x30f   :  { %v184_v54 = vcvt.s32.f32 %v182_v53  ;;  %v183_v61 = vcvt.s32.f32 %v181_v58 }
 0x311   :  { %185 = vmin.xlane.f32.xlu1 %v184_v54 }
 0x396   :  { %v171_v56 = vpop.xlane.xlu0 %170 }
 0x397   :  { %vm172_vm10 = vcmp.eq.f32.partialorder %v169_v51, %v171_v56  ;;  %v177_v63 = vcvt.f32.s32 %v171_v56  ;;  %v147_v56 = vsel %vm146_vm12, %v399_v13, 0.0 }
 0x398   :  { %v173_v59 = vsel %vm172_vm10, %v168_v57, inf  ;;  %v196_v57 = vsel %vm195_vm13, %v413_v45, %v147_v56 }
 0x399   :  { %174 = vmin.xlane.f32.xlu0 %v173_v59  ;;  %v178_v1 = vshll.u32 %v177_v63, 16 }
 0x39a   :  { %v186_v60 = vpop.xlane.xlu1 %185 }
 0x39b   :  { %vm187_vm11 = vcmp.eq.f32.partialorder %v184_v54, %v186_v60  ;;  %v192_v2 = vcvt.f32.s32 %v186_v60 }
 0x39c   :  { %v188_v62 = vsel %vm187_vm11, %v183_v61, inf  ;;  %v148_v61 = vsel %vm146_vm12, %v404_v16, 0.0  ;;  %vm304_vm11 = vcmask 31744  }
 0x39d   :  { %189 = vmin.xlane.f32.xlu1 %v188_v62  ;;  %v193_v7 = vshll.u32 %v192_v2, 16  ;;  %v197_v45 = vsel %vm195_vm13, %v418_v48, %v148_v61 }
 0x422   :  { %v175_v0 = vpop.xlane.xlu0 %174 }
 0x423   :  { %v176_v3 = vcvt.f32.s32 %v175_v0 }
 0x425   :  { %v179_v4 = vadd.s32 %v178_v1, %v176_v3 }
 0x426   :  { %v190_v6 = vpop.xlane.xlu1 %189 }
 0x427   :  { %v198_v8 = vsel %vm195_vm13, %v179_v4, %v149_v5  ;;  %v191_v9 = vcvt.f32.s32 %v190_v6  ;;  %vm200_vm14 = vcmp.eq.s32.totalorder %v397_v12, %v179_v4 }
 0x428   :  { %v202_v10 = vsel %vm200_vm14, -inf, %v153_v40 }
 0x429   :  { %v194_v11 = vadd.s32 %v193_v7, %v191_v9  ;;  %v204_v14 = vsel %vm103_vm1, %v202_v10, -inf }
 0x42a   :  { %205 = vmax.xlane.f32.xlu0 %v204_v14 }
 0x42b   :  { %v199_v17 = vsel %vm195_vm13, %v194_v11, %v150_v15  ;;  %vm201_vm15 = vcmp.eq.s32.totalorder %v397_v12, %v194_v11 }
 0x42c   :  { %v203_v18 = vsel %vm201_vm15, -inf, %v154_v43 }
 0x42d   :  { %v207_v19 = vsel %vm103_vm1, %v203_v18, -inf }
 0x42e   :  { %208 = vmax.xlane.f32.xlu1 %v207_v19 }
 0x4b3   :  { %v206_v20 = vpop.xlane.xlu0 %205 }
 0x4b4   :  { %vm210_vm0 = vcmp.eq.f32.partialorder %v202_v10, %v206_v20  ;;  %v245_v58 = vsel %vm244_vm5, %v206_v20, %v196_v57 }
 0x4b5   :  { %v212_v21 = vsel %vm210_vm0, %v397_v12, 16 }
 0x4b6   :  { %v214_v22 = vsel %vm103_vm1, %v212_v21, 2147483647 }
 0x4b7   :  { %v209_v23 = vpop.xlane.xlu1 %208  ;;  %v216_v24 = vshra.s32 %v214_v22, 16  ;;  %v215_v30 = vand.u32 65535, %v214_v22 }
 0x4b8   :  { %vm211_vm2 = vcmp.eq.f32.partialorder %v203_v18, %v209_v23  ;;  %v246_v1 = vsel %vm244_vm5, %v209_v23, %v197_v45 }
 0x4b9   :  { %v213_v25 = vsel %vm211_vm2, %v397_v12, 16  ;;  %v218_v26 = vcvt.s32.f32 %v216_v24  ;;  %v217_v32 = vcvt.s32.f32 %v215_v30 }
 0x4ba   :  { %v229_v27 = vsel %vm103_vm1, %v213_v25, 2147483647 }
 0x4bb   :  { %219 = vmin.xlane.f32.xlu0 %v218_v26  ;;  %v231_v28 = vshra.s32 %v229_v27, 16  ;;  %v230_v33 = vand.u32 65535, %v229_v27 }
 0x4bd   :  { %v233_v29 = vcvt.s32.f32 %v231_v28  ;;  %v232_v36 = vcvt.s32.f32 %v230_v33 }
 0x4bf   :  { %234 = vmin.xlane.f32.xlu1 %v233_v29 }
 0x544   :  { %v220_v31 = vpop.xlane.xlu0 %219 }
 0x545   :  { %vm221_vm3 = vcmp.eq.f32.partialorder %v218_v26, %v220_v31  ;;  %v226_v38 = vcvt.f32.s32 %v220_v31 }
 0x546   :  { %v222_v34 = vsel %vm221_vm3, %v217_v32, inf }
 0x547   :  { %223 = vmin.xlane.f32.xlu0 %v222_v34  ;;  %v227_v40 = vshll.u32 %v226_v38, 16 }
 0x548   :  { %v235_v35 = vpop.xlane.xlu1 %234 }
 0x549   :  { %vm236_vm4 = vcmp.eq.f32.partialorder %v233_v29, %v235_v35  ;;  %v241_v41 = vcvt.f32.s32 %v235_v35 }
 0x54a   :  { %v237_v37 = vsel %vm236_vm4, %v232_v36, inf }
 0x54b   :  { %238 = vmin.xlane.f32.xlu1 %v237_v37  ;;  %v242_v46 = vshll.u32 %v241_v41, 16 }
 0x5d0   :  { %v224_v39 = vpop.xlane.xlu0 %223 }
 0x5d1   :  { %v225_v42 = vcvt.f32.s32 %v224_v39 }
 0x5d3   :  { %v228_v43 = vadd.s32 %v227_v40, %v225_v42 }
 0x5d4   :  { %v239_v44 = vpop.xlane.xlu1 %238 }
 0x5d5   :  { %v444_v47 = vsel %vm244_vm5, %v228_v43, %v198_v8  ;;  %v240_v49 = vcvt.f32.s32 %v239_v44  ;;  %vm249_vm6 = vcmp.eq.s32.totalorder %v397_v12, %v228_v43 }
 0x5d6   :  { %v251_v50 = vsel %vm249_vm6, -inf, %v202_v10 }
 0x5d7   :  { %v243_v51 = vadd.s32 %v242_v46, %v240_v49  ;;  %v253_v52 = vsel %vm103_vm1, %v251_v50, -inf }
 0x5d8   :  { %254 = vmax.xlane.f32.xlu0 %v253_v52 }
 0x5d9   :  { %v450_v53 = vsel %vm244_vm5, %v243_v51, %v199_v17  ;;  %vm250_vm7 = vcmp.eq.s32.totalorder %v397_v12, %v243_v51 }
 0x5da   :  { %v252_v54 = vsel %vm250_vm7, -inf, %v203_v18 }
 0x5db   :  { %v256_v55 = vsel %vm103_vm1, %v252_v54, -inf }
 0x5dc   :  { %257 = vmax.xlane.f32.xlu1 %v256_v55 }
 0x661   :  { %v255_v59 = vpop.xlane.xlu0 %254 }
 0x662   :  { %vm259_vm9 = vcmp.eq.f32.partialorder %v251_v50, %v255_v59  ;;  %v294_v60 = vsel %vm293_vm8, %v255_v59, %v245_v58 }
 0x663   :  { %v261_v62 = vsel %vm259_vm9, %v397_v12, 16  ;;  %v298_v63 = vsub.f32 %v294_v60, %v399_v13 }
 0x664   :  { %v263_v0 = vsel %vm103_vm1, %v261_v62, 2147483647 }
 0x665   :  { %v300_v2 = vmul.f32 1.442695, %v298_v63  ;;  %v258_v3 = vpop.xlane.xlu1 %257  ;;  %v265_v4 = vshra.s32 %v263_v0, 16  ;;  %v264_v18 = vand.u32 65535, %v263_v0 }
 0x666   :  { %vm260_vm10 = vcmp.eq.f32.partialorder %v252_v54, %v258_v3  ;;  %v295_v5 = vsel %vm293_vm8, %v258_v3, %v246_v1 }
 0x667   :  { %352 = vpow2.f32 %v300_v2  ;;  %v262_v6 = vsel %vm260_vm10, %v397_v12, 16  ;;  %v299_v13 = vsub.f32 %v295_v5, %v404_v16  ;;  %v267_v7 = vcvt.s32.f32 %v265_v4 }
 0x668   :  { %v278_v48 = vsel %vm103_vm1, %v262_v6, 2147483647  ;;  %v266_v19 = vcvt.s32.f32 %v264_v18 }
 0x669   :  { %v302_v8 = vmul.f32 1.442695, %v299_v13  ;;  %268 = vmin.xlane.f32.xlu0 %v267_v7  ;;  %v280_v9 = vshra.s32 %v278_v48, 16  ;;  %v279_v20 = vand.u32 65535, %v278_v48 }
 0x66b   :  { %354 = vpow2.f32 %v302_v8  ;;  %v282_v10 = vcvt.s32.f32 %v280_v9  ;;  %v281_v23 = vcvt.s32.f32 %v279_v20 }
 0x66d   :  { %283 = vmin.xlane.f32.xlu1 %v282_v10 }
 0x674   :  { %v353_v11 = vpop.eup %352 }
 0x675   :  { %v305_v14 = vsel %vm304_vm11, %v353_v11, 0.0 }
 0x676   :  { %306 = vadd.xlane.f32.xlu0 %v305_v14 }
 0x678   :  { %v355_v15 = vpop.eup %354 }
 0x679   :  { %v308_v17 = vsel %vm304_vm11, %v355_v15, 0.0 }
 0x67a   :  { %309 = vadd.xlane.f32.xlu1 %v308_v17 }
 0x6f2   :  { %v269_v16 = vpop.xlane.xlu0 %268 }
 0x6f3   :  { %vm270_vm1 = vcmp.eq.f32.partialorder %v267_v7, %v269_v16  ;;  %v275_v33 = vcvt.f32.s32 %v269_v16 }
 0x6f4   :  { %v271_v21 = vsel %vm270_vm1, %v266_v19, inf }
 0x6f5   :  { %272 = vmin.xlane.f32.xlu0 %v271_v21  ;;  %v276_v35 = vshll.u32 %v275_v33, 16 }
 0x6f6   :  { %v284_v22 = vpop.xlane.xlu1 %283 }
 0x6f7   :  { %vm285_vm12 = vcmp.eq.f32.partialorder %v282_v10, %v284_v22  ;;  %v290_v36 = vcvt.f32.s32 %v284_v22 }
 0x6f8   :  { %v286_v24 = vsel %vm285_vm12, %v281_v23, inf }
 0x6f9   :  { %287 = vmin.xlane.f32.xlu1 %v286_v24  ;;  %v291_v40 = vshll.u32 %v290_v36, 16 }
 0x6ff   :  { %v307_v25 = vpop.xlane.xlu0 %306 }
 0x700   :  { %v311_v26 = vadd.f32 1e-20, %v307_v25 }
 0x702   :  { %356 = vrcp.f32 %v311_v26 }
 0x703   :  { %v310_v27 = vpop.xlane.xlu1 %309 }
 0x704   :  { %v312_v28 = vadd.f32 1e-20, %v310_v27 }
 0x706   :  { %358 = vrcp.f32 %v312_v28 }
 0x70f   :  { %v357_v29 = vpop.eup %356 }
 0x710   :  { %v314_v30 = vmul.f32 %v357_v29, %v353_v11 }
 0x712   :  { %319 = vst.msk [vmem:[%s507_s3] sm:$0xff] %vm304_vm11, %v314_v30 }
 0x713   :  { %v359_v31 = vpop.eup %358 }
 0x714   :  { %v316_v32 = vmul.f32 %v359_v31, %v355_v15 }
 0x716   :  { %320 = vst.msk [vmem:[%s507_s3 + $0x8] sm:$0xff] %vm304_vm11, %v316_v32 }
 0x77e   :  { %v273_v34 = vpop.xlane.xlu0 %272 }
 0x77f   :  { %v274_v37 = vcvt.f32.s32 %v273_v34 }
 0x781   :  { %v277_v38 = vadd.s32 %v276_v35, %v274_v37 }
 0x782   :  { %v288_v39 = vpop.xlane.xlu1 %287 }
 0x783   :  { %v296_v41 = vsel %vm293_vm8, %v277_v38, %v444_v47  ;;  %v289_v42 = vcvt.f32.s32 %v288_v39 }
 0x784   :  { %317 = vst.msk [vmem:[%s508_s2] sm:$0xff] %vm304_vm11, %v296_v41 }
 0x785   :  { %v292_v43 = vadd.s32 %v291_v40, %v289_v42 }
 0x787   :  { %v297_v44 = vsel %vm293_vm8, %v292_v43, %v450_v53 }
 0x788   :  { %318 = vst.msk [vmem:[%s508_s2 + $0x8] sm:$0xff] %vm304_vm11, %v297_v44 }

</bundles_post_ra>
